<compile_context>
chip_gen: v5e
topology: v5e:2x2
jax: 0.10.0
libtpu: 0.0.40
codegen_flags: <defaults>
</compile_context>

<pallas_src>
import math

import jax
import jax.numpy as jnp
from jax.experimental import pallas as pl
from jax.experimental.pallas import tpu as pltpu


def _round_up(v, m):
    return (v + m - 1) // m * m


def _vmem_limit_bytes():
    """~75% of this generation's per-core VMEM (conservative 48 MiB fallback)."""
    cap = None
    try:
        cap = getattr(pltpu.get_tpu_info(), "vmem_capacity_bytes", None)
    except Exception:
        cap = None
    if not cap:
        cap = 64 * 1024 * 1024          # v7x-safe conservative default
    return int(cap) * 3 // 4


# --------------------------- stage 1: support = x @ W -----------------------
def _support_kernel(x_ref, w_ref, o_ref):
    # x_ref: (1, TS, F_in), w_ref: (F_in, F_out_pad), o_ref: (1, TS, F_out_pad)
    o_ref[0] = jnp.dot(
        x_ref[0], w_ref[...], preferred_element_type=jnp.float32
    ).astype(o_ref.dtype)


# ----------------------- stage 2: out = adj @ support + bias ----------------
def _aggregate_kernel(adj_ref, sup_ref, b_ref, o_ref, acc_ref):
    # adj_ref: (1, TM, TK)   native adj dtype
    # sup_ref: (1, TK, F_out_pad)  support dtype
    # b_ref:   (1, 1, F_out_pad)   f32
    # o_ref:   (1, TM, F_out_pad)  out dtype
    # acc_ref: (TM, F_out_pad)     f32 scratch
    k = pl.program_id(2)
    nk = pl.num_programs(2)

    @pl.when(k == 0)
    def _():
        acc_ref[...] = jnp.zeros_like(acc_ref)

    acc_ref[...] += jnp.dot(adj_ref[0], sup_ref[0],
                            preferred_element_type=jnp.float32)

    @pl.when(k == nk - 1)
    def _():
        o_ref[0] = (acc_ref[...] + b_ref[0]).astype(o_ref.dtype)


def _pick_adj_tiles(N_pad, F_out_pad, adj_item, sup_item, out_item, budget):
    """Largest (TM, TK) dividing N_pad whose stage-2 VMEM footprint fits."""
    if N_pad <= 512:
        return N_pad, N_pad
    tm_cands = [t for t in (512, 256, 128) if N_pad % t == 0]
    tk_cands = [t for t in (2048, 1024, 512, 256, 128) if N_pad % t == 0]
    best = None
    for tm in tm_cands:
        for tk in tk_cands:
            vmem = (2 * tm * tk * adj_item            # adj (double-buffered)
                    + 2 * tk * F_out_pad * sup_item   # support (double-buffered)
                    + 2 * tm * F_out_pad * out_item   # output (double-buffered)
                    + tm * F_out_pad * 4              # f32 accumulator scratch
                    + 2 * F_out_pad * 4)              # bias
            if vmem <= budget:
                key = (tm * tk, tk)                   # maximize per-step adj bytes
                if best is None or key > best[0]:
                    best = (key, tm, tk)
    if best is None:
        return 128, 128
    return best[1], best[2]


def graph_convolution(x, adj_all, weight, bias=None, *,
                      support_dtype=jnp.float32, interpret=False):
    """Pallas GCN forward.

    x:       (B, N, F_in)
    adj_all: (B, N, N)   streamed in its native dtype
    weight:  (F_in, F_out)
    bias:    (1, 1, F_out) or None
    support_dtype: storage dtype of the intermediate x @ W (f32 = torch-faithful).
    returns: (B, N, F_out) with x.dtype
    """
    B, N, F_in = x.shape
    F_in_w, F_out = weight.shape
    assert F_in_w == F_in, "weight in_features mismatch"
    out_dtype = x.dtype

    # ---- layout / tiling decisions ----------------------------------------
    F_out_pad = _round_up(F_out, 256 if F_out >= 384 else 128)   # lane-dense out
    if N <= 512:
        N_pad = _round_up(N, 8)          # single full tile per batch element
    else:
        N_pad = _round_up(N, 128)

    vmem_limit = _vmem_limit_bytes()
    adj_item = jnp.dtype(adj_all.dtype).itemsize
    sup_item = jnp.dtype(support_dtype).itemsize
    out_item = jnp.dtype(out_dtype).itemsize
    TM, TK = _pick_adj_tiles(N_pad, F_out_pad, adj_item, sup_item, out_item,
                             (vmem_limit * 7) // 10)
    TS = N_pad if N_pad <= 512 else max(
        t for t in (512, 256, 128) if N_pad % t == 0)

    # ---- pad operands (adj kept in its native dtype; no wrapper casts) ----
    x_p, adj_p, w_p = x, adj_all, weight
    if N_pad != N:
        x_p = jnp.pad(x_p, ((0, 0), (0, N_pad - N), (0, 0)))
        adj_p = jnp.pad(adj_p, ((0, 0), (0, N_pad - N), (0, N_pad - N)))
    if F_out_pad != F_out:
        w_p = jnp.pad(w_p, ((0, 0), (0, F_out_pad - F_out)))
    if bias is None:
        b_p = jnp.zeros((1, 1, F_out_pad), jnp.float32)
    else:
        b_p = bias.astype(jnp.float32)
        if F_out_pad != F_out:
            b_p = jnp.pad(b_p, ((0, 0), (0, 0), (0, F_out_pad - F_out)))

    # ---- stage 1: support = x @ W  (padded x rows -> zero support rows) ----
    support = pl.pallas_call(
        _support_kernel,
        out_shape=jax.ShapeDtypeStruct((B, N_pad, F_out_pad), support_dtype),
        grid_spec=pltpu.PrefetchScalarGridSpec(
            num_scalar_prefetch=0,
            grid=(B, N_pad // TS),
            in_specs=[
                pl.BlockSpec((1, TS, F_in), lambda b, i: (b, i, 0)),
                pl.BlockSpec((F_in, F_out_pad), lambda b, i: (0, 0)),
            ],
            out_specs=pl.BlockSpec((1, TS, F_out_pad), lambda b, i: (b, i, 0)),
        ),
        compiler_params=pltpu.CompilerParams(
            dimension_semantics=("parallel", "parallel"),
            vmem_limit_bytes=vmem_limit,
        ),
        interpret=interpret,
    )(x_p, w_p)

    # ---- stage 2: out = adj @ support + bias -------------------------------
    n_row = N_pad // TM
    n_k = N_pad // TK

    flops = 2 * B * N_pad * N_pad * F_out_pad
    bytes_accessed = (B * N_pad * N_pad * adj_item            # adj
                      + B * N_pad * F_out_pad * sup_item      # support
                      + F_out_pad * 4                         # bias
                      + B * N_pad * F_out_pad * out_item)     # output
    cost = pl.CostEstimate(flops=int(flops), transcendentals=0,
                           bytes_accessed=int(bytes_accessed))

    out_padded = pl.pallas_call(
        _aggregate_kernel,
        out_shape=jax.ShapeDtypeStruct((B, N_pad, F_out_pad), out_dtype),
        grid_spec=pltpu.PrefetchScalarGridSpec(
            num_scalar_prefetch=0,
            grid=(B, n_row, n_k),
            in_specs=[
                # adj: tiled over (row tile, contraction tile).
                pl.BlockSpec((1, TM, TK), lambda b, i, k: (b, i, k)),
                # support: streamed along the contraction axis.
                pl.BlockSpec((1, TK, F_out_pad), lambda b, i, k: (b, k, 0)),
                # bias: tiny, constant.
                pl.BlockSpec((1, 1, F_out_pad), lambda b, i, k: (0, 0, 0)),
            ],
            out_specs=pl.BlockSpec((1, TM, F_out_pad), lambda b, i, k: (b, i, 0)),
            scratch_shapes=[pltpu.VMEM((TM, F_out_pad), jnp.float32)],
        ),
        compiler_params=pltpu.CompilerParams(
            dimension_semantics=("parallel", "parallel", "arbitrary"),
            vmem_limit_bytes=vmem_limit,
        ),
        cost_estimate=cost,
        interpret=interpret,
    )(adj_p, support, b_p)

    return out_padded[:, :N, :F_out]


if __name__ == "__main__":
    # Small shapes consistent with the module's forward.
    B, N, F_IN, F_OUT = 2, 8, 32, 16

    key = jax.random.PRNGKey(0)
    k_x, k_adj, k_w, k_b = jax.random.split(key, 4)

    x = jax.random.normal(k_x, (B, N, F_IN), dtype=jnp.float32)

    # Row-normalized adjacency (deterministic dense graph).
    adj_raw = jax.random.uniform(k_adj, (B, N, N), dtype=jnp.float32)
    adj_all = adj_raw / jnp.sum(adj_raw, axis=-1, keepdims=True)

    # reset_parameters(): uniform(-stdv, stdv), stdv = 1 / sqrt(out_features)
    stdv = 1.0 / math.sqrt(F_OUT)
    weight = jax.random.uniform(
        k_w, (F_IN, F_OUT), dtype=jnp.float32, minval=-stdv, maxval=stdv)
    bias = jax.random.uniform(
        k_b, (1, 1, F_OUT), dtype=jnp.float32, minval=-stdv, maxval=stdv)

    # Plain-JAX reference.
    support_ref = jnp.matmul(x, weight)
    ref_nobias = jnp.matmul(adj_all, support_ref)
    ref_bias = ref_nobias + bias

    # --- default f32 path: faithful to the torch module ---
    out_bias = jax.block_until_ready(graph_convolution(x, adj_all, weight, bias))
    out_nobias = jax.block_until_ready(graph_convolution(x, adj_all, weight, None))
    assert out_bias.shape == (B, N, F_OUT)
    assert out_nobias.shape == (B, N, F_OUT)
    assert jnp.allclose(out_bias, ref_bias, atol=1e-5, rtol=1e-5)
    assert jnp.allclose(out_nobias, ref_nobias, atol=1e-5, rtol=1e-5)

    # --- bf16 intermediate-support path (f32 MXU accumulation) ---
    out_bias_bf16 = jax.block_until_ready(
        graph_convolution(x, adj_all, weight, bias, support_dtype=jnp.bfloat16))
    out_nobias_bf16 = jax.block_until_ready(
        graph_convolution(x, adj_all, weight, None, support_dtype=jnp.bfloat16))
    assert jnp.allclose(out_bias_bf16, ref_bias, atol=5e-2, rtol=5e-2)
    assert jnp.allclose(out_nobias_bf16, ref_nobias, atol=5e-2, rtol=5e-2)

    print("KERNEL_OK")
</pallas_src>

<mosaic_0001>
module attributes {stable_mosaic.version = 11 : i64} {
  func.func @_support_kernel(%arg0: i32, %arg1: i32, %arg2: memref<1x8x32xf32, #tpu.memory_space<vmem>>, %arg3: memref<32x128xf32, #tpu.memory_space<vmem>>, %arg4: memref<1x8x128xf32, #tpu.memory_space<vmem>>) attributes {dimension_semantics = [#tpu.dimension_semantics<parallel>, #tpu.dimension_semantics<parallel>], iteration_bounds = array<i64: 2, 1>, scalar_prefetch = 0 : i64, scratch_operands = 0 : i64, tpu.core_type = #tpu.core_type<tc>, window_params = [{transform_indices = @transform_0, window_bounds = array<i64: 1, 8, 32>}, {pipeline_mode = #tpu.pipeline_mode<synchronous>, transform_indices = @transform_1, window_bounds = array<i64: 32, 128>}, {transform_indices = @transform_2, window_bounds = array<i64: 1, 8, 128>}]} {
    %c0 = arith.constant 0 : index
    %c0_0 = arith.constant 0 : index
    %c0_1 = arith.constant 0 : index
    %0 = vector.load %arg2[%c0, %c0_0, %c0_1] : memref<1x8x32xf32, #tpu.memory_space<vmem>>, vector<1x8x32xf32>
    %1 = vector.shape_cast %0 : vector<1x8x32xf32> to vector<8x32xf32>
    %c0_2 = arith.constant 0 : index
    %c0_3 = arith.constant 0 : index
    %2 = vector.load %arg3[%c0_2, %c0_3] : memref<32x128xf32, #tpu.memory_space<vmem>>, vector<32x128xf32>
    %cst = arith.constant dense<0.000000e+00> : vector<8x128xf32>
    %3 = tpu.matmul %1, %2, %cst {dimension_numbers = #tpu.dot_dimension_numbers<[1], [0], [0], [1], [0, 0, 1, 1], [], []>} : vector<8x32xf32>, vector<32x128xf32>, vector<8x128xf32> -> vector<8x128xf32>
    %c0_4 = arith.constant 0 : index
    %c0_5 = arith.constant 0 : index
    %c0_6 = arith.constant 0 : index
    %4 = vector.load %arg4[%c0_4, %c0_5, %c0_6] : memref<1x8x128xf32, #tpu.memory_space<vmem>>, vector<1x8x128xf32>
    %5 = vector.shape_cast %4 : vector<1x8x128xf32> to vector<8x128xf32>
    %6 = vector.shape_cast %3 : vector<8x128xf32> to vector<1x8x128xf32>
    tpu.vector_store %arg4[%c0_4, %c0_5, %c0_6], %6 {strides = array<i32>} : memref<1x8x128xf32, #tpu.memory_space<vmem>>, vector<1x8x128xf32>,
    return
  }
  func.func @transform_0(%arg0: i32, %arg1: i32) -> (i32, i32, i32) {
    %c0_i32 = arith.constant 0 : i32
    %c0_i32_0 = arith.constant 0 : i32
    return %arg0, %arg1, %c0_i32 : i32, i32, i32
  }
  func.func @transform_1(%arg0: i32, %arg1: i32) -> (i32, i32) {
    %c0_i32 = arith.constant 0 : i32
    %c0_i32_0 = arith.constant 0 : i32
    %c0_i32_1 = arith.constant 0 : i32
    return %c0_i32, %c0_i32_0 : i32, i32
  }
  func.func @transform_2(%arg0: i32, %arg1: i32) -> (i32, i32, i32) {
    %c0_i32 = arith.constant 0 : i32
    %c0_i32_0 = arith.constant 0 : i32
    return %arg0, %arg1, %c0_i32 : i32, i32, i32
  }
}

</mosaic_0001>

<bundles_post_ra>
// kernel: tpu_custom_call.1
= control target key start
LH: loop header
LB: loop body
LE: loop exit
PB: predicated region body
PF: predicated region fallthrough
CT: control target
= control target key end

     0   :  { %7 = vsyncpa [#allocation3], 0  ;;  %s732_s0 = inlined_call_operand.hbm [shape: f32[2,8,32], index: 0, kind: input, shape index: {}]   ;;  %s733_s1 = inlined_call_operand.hbm [shape: f32[32,128], index: 1, kind: input, shape index: {}]   ;;  %s734_s2 = inlined_call_operand.hbm [shape: f32[2,8,128], index: 2, kind: output, shape index: {}]  }
   0x1   :  { %9 = vsyncpa [#allocation3 + $0x1], 0 }
   0x2   :  { %10 = vsyncpa [#allocation6], 0 }
   0x3   :  { %11 = vsyncpa [#allocation4], 0 }
   0x4   :  { %13 = vsyncpa [#allocation4 + $0x1], 0  ;;  %s589_s9 = smov 0   ;;  %s591_s10 = smov 0  }
   0x5   :  { %s593_s11 = smov 0   ;;  %s595_s12 = smov 0  }
   0x6   :  { %s597_s13 = smov 0   ;;  %s599_s14 = smov 0  }
   0x7 LB: > { %s332_s15 = sadd.s32 4294967295, %s569_s14   ;;  %p334_p0 = scmp.ge.s32.totalorder %s569_s14, 1  ;;  %s569_s14 = sphi %s599_s14, %s19_s14   ;;  %s565_s13 = sphi %s597_s13, %s745_s13   ;;  %s561_s12 = sphi %s595_s12, %s744_s12   ;;  %s557_s11 = sphi %s593_s11, %s743_s11   ;;  %s553_s10 = sphi %s591_s10, %s742_s10   ;;  %s549_s9 = sphi %s589_s9, %s741_s9  }
   0x8   : > { %p621_p1 = scmp.eq.s32.totalorder %s332_s15, 0  ;;  %p113_p2 = scmp.lt.s32.totalorder %s569_s14, 3 }
   0x9   : > { %s124_s19 = sshll.u32 %s733_s1, 4  ;;  %s571_s21 = smov [#allocation5]   ;;  %s125_s19 = int_to_ptr.hbm [resolvable:$true] %s124_s19 }
   0xa   : > { %p629_p3 = pnand %p334_p0, %p113_p2  ;;  %s126_s22 = sshll.u32 %s571_s21, 4  ;;  %s127_s22 = int_to_ptr.vmem [resolvable:$true] %s126_s22 }
   0xb   : > { %p336_p6 = scmp.ge.s32.totalorder %s569_s14, 2  ;;  %s572_s23 = smov 128  }
   0xc   : > { %p356_p4 = pneg %p629_p3  ;;  %s573_s24 = smov 8  }
   0xd   : > { %s333_s25 = sadd.s32 4294967294, %s569_s14   ;;  %s31_s26 = sadd.s32 1, %s565_s13 }
   0xe   : > { %p357_p5 = pnand %p356_p4, %p621_p1  ;;  %s40_s27 = sadd.s32 1, %s557_s11 }
   0xf   : > { %p33_p7 = scmp.ge.s32.totalorder %s31_s26, 2  ;;  %p47_p8 = scmp.ne.s32.totalorder %s557_s11, %s553_s10 }
  0x10   : > { %359 = dma.hbm_to_vmem [thread:$0]  (!%p357_p5), %s125_s19, 512, %s127_s22, [#allocation6], %s572_s23, %s572_s23, %s573_s24  }
  0x11   : > { %p48_p9 = scmp.eq.s32.totalorder %s569_s14, 0  ;;  %p53_p10 = scmp.ne.s32.totalorder %s553_s10, %s549_s9 }
  0x12   : > { %s747_s26 = smov (%p33_p7, %s31_s26), 0  ;;  %p100_p13 = scmp.eq.s32.totalorder %s332_s15, 1 }
  0x13   : > { %p648_p11 = por %p48_p9, %p47_p8  ;;  %p654_p12 = por %p621_p1, %p53_p10 }
  0x14   : > { %s35_s30 = ssub.s32 %s565_s13, %s747_s26  ;;  %p106_p2 = scmp.eq.s32.totalorder %s333_s25, 1 }
  0x15   : > { %p38_p0 = scmp.eq.s32.totalorder %s35_s30, 0  ;;  %p660_p4 = por %p100_p13, %p47_p8 }
  0x16   : > { %p369_p5 = scmp.lt.s32.totalorder %s569_s14, 2  ;;  %p668_p7 = por %p106_p2, %p53_p10 }
  0x17   : > { %s666_s4 = scalar_select %p38_p0, %s557_s11, %s40_s27  }
  0x18   : > { %s140_s6 = sand.u32 1, %s557_s11   ;;  %s338_s8 = sshll.u32 %s565_s13, 3 }
  0x19   : > { %s337_s7 = sshll.u32 %s140_s6, 3  ;;  %s149_s15 = scalar_lea.hbm %s732_s0, %s338_s8 }
  0x1a   : > { %s144_s19 = scalar_lea.vmem [#allocation2], %s337_s7  ;;  %s151_s22 = sshll.u32 %s149_s15, 4  ;;  %s152_s22 = int_to_ptr.hbm [resolvable:$true] %s151_s22 }
  0x1b   : > { %s153_s21 = sshll.u32 %s144_s19, 4  ;;  %p361_p8 = pnand %p369_p5, %p648_p11  ;;  %s154_s21 = int_to_ptr.vmem [resolvable:$true] %s153_s21 }
  0x1c   : > { %s141_s23 = scalar_lea.sflag [#allocation3], %s140_s6  ;;  %162 = sbr.rel (%p629_p3) target bundleno = 173 (0xad), region = 28 }
  0x1d   : > { %363 = dma.hbm_to_vmem [thread:$0]  (!%p361_p8), %s152_s22, 128, %s154_s21, %s141_s23  }
  0x1e   : > { %s682_s24 = sand.u32 (!%p629_p3), 1, %s553_s10  }
  0x1f   : > { %s340_s25 = sshll.u32 (!%p629_p3), %s682_s24, 3  ;;  %s165_s27 = scalar_lea.sflag (!%p629_p3), [#allocation3], %s682_s24 }
  0x20   : > { %s168_s30 = scalar_lea.vmem (!%p629_p3), [#allocation2], %s340_s25 }
  0x21   : > { %536 = dma.done.wait (%p654_p12), %s165_s27, 128  }
  0x22   : > { %538 = vsyncadd (%p654_p12), %s165_s27, 4294967168 }
  0x23   : > { %540 = dma.done.wait (%p621_p1), [#allocation6], 512  }
  0x24   : > { %542 = vsyncadd (%p621_p1), [#allocation6], 4294966784  ;;  %v199_v0 = vld [vmem:[#allocation5 + $0x18] sm:$0xff]  ;;  %v198_v1 = vld [vmem:[#allocation5 + $0x10] sm:$0xff]  ;;  %vm200_vm0 = vcmask 261120   ;;  %s345_s20 = sshll.u32 %s561_s12, 3 }
  0x25   : > { %216 = vmatpush.msra.mxu0 %v199_v0  ;;  %v197_v2 = vld [vmem:[#allocation5 + $0x8] sm:$0xff]  ;;  %v196_v3 = vld [vmem:[#allocation5] sm:$0xff]  ;;  %v195_v4 = vld [vmem:[%s168_s30] sm:$0xff]  ;;  %s237_s16 = scalar_lea.hbm %s734_s2, %s345_s20  ;;  %s194_s6 = scalar_lea.vmem [#allocation7], %s340_s25 }
  0x26   : > { %s239_s7 = sshll.u32 %s194_s6, 4  ;;  %s241_s8 = sshll.u32 %s237_s16, 4  ;;  %s240_s7 = int_to_ptr.vmem [resolvable:$true] %s239_s7  ;;  %s242_s8 = int_to_ptr.hbm [resolvable:$true] %s241_s8 }
  0x27   : > { %217 = vmatpush.msra.mxu0 %v198_v1  ;;  %s226_s17 = scalar_lea.sflag [#allocation4], %s682_s24  ;;  %s497_s18 = sshra.s32 %s242_s8, 4  ;;  %s498_s18 = int_to_ptr.hbm [resolvable:$true] %s497_s18 }
  0x28   : > { %s499_s15 = scalar_lea.hbm %s498_s18, 8  ;;  %s503_s21 = scalar_lea.hbm %s734_s2, 16 }
  0x29   : > { %218 = vmatpush.msra.mxu0 %v197_v2  ;;  %p500_p1 = scmp.ne.s32.totalorder %s498_s18, %s499_s15  ;;  %p504_p10 = scmp.lt.s32.totalorder %s498_s18, %s734_s2 }
  0x2a   : > { %p505_p11 = scmp.lt.s32.totalorder %s503_s21, %s499_s15 }
  0x2b   : > { %219 = vmatpush.msra.mxu0 %v196_v3  ;;  %p501_p3 = pnand %p500_p1, %p660_p4 }
  0x2c   : > { %343 = vmatmul.msk.f32.vlgmr.msra.gmra.mxu0 %vm200_vm0, %v195_v4  ;;  %p506_p12 = por %p505_p11, %p504_p10 }
  0x2d   : > { %p502_p9 = pneg %p501_p3 }
  0x2f   : > { %p507_p13 = pnand %p506_p12, %p502_p9 }
  0xa9   : > { %v221_v5 = vpop.f32.mrf.mxu0 }
  0xaa   : > { %224 = vst [vmem:[%s194_s6] sm:$0xff] %v221_v5 }
  0xab   : > { %510 = shalt.err (!%p507_p13)
}
  0xac   : > { %354 = dma.vmem_to_hbm [thread:$0]  (%p660_p4), %s240_s7, 128, %s242_s8, %s226_s17  }
  0xad PF: > { %s253_s24 = sand.u32 1, %s549_s9   ;;  %p365_p0 = pnand %p336_p6, %p668_p7 }
  0xae   : > { %s254_s25 = scalar_lea.sflag [#allocation4], %s253_s24 }
  0xaf   : > { %p366_p2 = pneg %p365_p0 }
  0xb1   : > { %544 = dma.done.wait (%p366_p2), %s254_s25, 128  }
  0xb2   : > { %546 = vsyncadd (%p366_p2), %s254_s25, 4294967168  ;;  %s19_s14 = sadd.s32 1, %s569_s14   ;;  %s741_s9 = smov %s553_s10 }
  0xb3   : > { %p16_p5 = scmp.ge.s32.totalorder %s19_s14, 4   ;;  %s742_s10 = smov %s557_s11 }
  0xb4   : > { %s743_s11 = smov %s666_s4  ;;  %s744_s12 = smov %s565_s13 }
  0xb5   : > { %s745_s13 = smov %s747_s26  ;;  %18 = sbr.rel (!%p16_p5) target bundleno = 7 (0x7), region = 77 }
  0xba   :  { %260 = vsyncpa [#allocation3], 1 }
  0xbb   :  { %262 = vsyncpa [#allocation3 + $0x1], 1 }
  0xbc   :  { %263 = vsyncpa [#allocation6], 1 }
  0xbd   :  { %264 = vsyncpa [#allocation4], 1 }
  0xbe   :  { %266 = vsyncpa [#allocation4 + $0x1], 1 }

</bundles_post_ra>
